<compile_context>
chip_gen: v7x
topology: tpu7x:2x2x1
jax: 0.10.0
libtpu: 0.0.40
codegen_flags: <defaults>
</compile_context>

<pallas_src>
import functools

import jax
import jax.numpy as jnp
from jax.experimental import pallas as pl
from jax.experimental.pallas import tpu as pltpu


def _cdiv(a, b):
    return -(-a // b)


def _round_up(a, b):
    return _cdiv(a, b) * b


def _pad_to_lane_divisor(n):
    """Smallest power-of-two >= n (a divisor of 128) for n <= 128, else n."""
    if n > 128:
        return n
    p = 1
    while p < n:
        p *= 2
    return p


def prepare_params(w_fc, b_fc, w_emb):
    """Hoist all weight transposes / padding / packing out of the hot path.

    Args (torch layouts):
      w_fc:  (3, F)  nn.Linear(F, 3).weight
      b_fc:  (3,)    nn.Linear(F, 3).bias
      w_emb: (D, 3)  nn.Linear(3, D, bias=False).weight
    Returns:
      w_fc_big:  (G*Fp, 3G)   block-diagonal fc weight for the packed layout
      b_big:     (1, 3G)      tiled bias
      w_emb_big: (3G, G*Dp)   block-diagonal (transposed) embedding weight
      meta:      (F, Fp, D, Dp, G)
    """
    _, F = w_fc.shape
    D, _ = w_emb.shape
    F_pad = _pad_to_lane_divisor(F)
    D_pad = _pad_to_lane_divisor(D)
    m = max(F_pad, D_pad)
    if m > 128:
        group, F_pad, D_pad = 1, F, D        # fall back to unpacked layout
    else:
        group = 128 // m                     # rows packed per 128-lane row

    w_fc_t = jnp.transpose(w_fc).astype(jnp.float32)              # (F, 3)
    if F_pad != F:
        w_fc_t = jnp.pad(w_fc_t, ((0, F_pad - F), (0, 0)))        # zero rows
    w_fc_big = jnp.kron(jnp.eye(group, dtype=jnp.float32), w_fc_t)  # (G*Fp, 3G)

    b_big = jnp.tile(b_fc.astype(jnp.float32), group).reshape(1, 3 * group)

    w_emb_t = jnp.transpose(w_emb).astype(jnp.float32)            # (3, D)
    if D_pad != D:
        w_emb_t = jnp.pad(w_emb_t, ((0, 0), (0, D_pad - D)))      # zero cols
    w_emb_big = jnp.kron(jnp.eye(group, dtype=jnp.float32), w_emb_t)  # (3G, G*Dp)

    meta = (F, F_pad, D, D_pad, group)
    return w_fc_big, b_big, w_emb_big, meta


def _classifier_kernel(x_ref, w_fc_ref, b_ref, w_emb_ref, logits_ref, emb_ref,
                       *, group):
    # x_ref:      (T, G*Fp)   lane-dense packed input tile
    # w_fc_ref:   (G*Fp, 3G)  block-diagonal fc weight
    # b_ref:      (1, 3G)
    # w_emb_ref:  (3G, G*Dp)  block-diagonal embedding weight
    # logits_ref: (T, 3G)     packed logits tile
    # emb_ref:    (T, G*Dp)   packed (lane-dense) embedding tile
    xp = x_ref[...]

    # fc for all G packed sub-rows in a single MXU pass (K = G*Fp).
    logits_p = jnp.dot(xp, w_fc_ref[...], preferred_element_type=jnp.float32)
    logits_p = logits_p + b_ref[...]
    logits_ref[...] = logits_p.astype(logits_ref.dtype)

    # Per-group (size-3) softmax.  max / sum are elementwise VPU ops on
    # single-lane columns (no XLU cross-lane reduce); one exp covers all
    # G*3 lanes at once (instead of G separate 3-lane exps).
    shifted = []
    for g in range(group):                       # static, tiny (<= 4 when packed)
        lg = logits_p[:, 3 * g:3 * g + 3]        # (T, 3)
        m = jnp.maximum(jnp.maximum(lg[:, 0:1], lg[:, 1:2]), lg[:, 2:3])
        shifted.append(lg - m)
    shifted_p = shifted[0] if group == 1 else jnp.concatenate(shifted, axis=-1)
    e_p = jnp.exp(shifted_p)                     # (T, 3G), single EUP pass

    probs = []
    for g in range(group):
        eg = e_p[:, 3 * g:3 * g + 3]
        denom = eg[:, 0:1] + eg[:, 1:2] + eg[:, 2:3]
        # Exact reciprocal: kernel is HBM-bound, the extra precision is free.
        probs.append(eg * pl.reciprocal(denom, approx=False))
    probs_p = probs[0] if group == 1 else jnp.concatenate(probs, axis=-1)

    # Embedding: one block-diagonal MXU matmul -> one dense (T, G*Dp) store.
    emb_ref[...] = jnp.dot(probs_p, w_emb_ref[...],
                           preferred_element_type=jnp.float32).astype(emb_ref.dtype)


def puzzle_type_classifier(x, params):
    """
    Args:
      x:      (B, P, F) float32
      params: output of prepare_params()
    Returns:
      logits: (B, P, 3) float32
      emb:    (B, P, D) float32
    """
    w_fc_big, b_big, w_emb_big, (F_in, F_pad, D_out, D_pad, group) = params
    B, P, F = x.shape
    assert F == F_in, "params do not match input feature dim"
    N = B * P

    n_groups = _cdiv(N, group)      # packed rows (128-lane rows when group > 1)
    n_rows = n_groups * group       # rows after (minimal) group-alignment pad

    # --- pack rows into a lane-dense slab (row-major reshape) ----------------
    x2 = x.reshape(N, F)
    if F_pad != F:
        x2 = jnp.pad(x2, ((0, 0), (0, F_pad - F)))       # zero features (zero wts)
    if n_rows != N:
        # At most (group - 1) tail rows; fuses with the pack reshape below.
        x2 = jnp.pad(x2, ((0, n_rows - N), (0, 0)))
    # NOTE: the pack reshape here (and the matching unpack below) is a TPU
    # tiled-layout relayout in the wrapper; in a full model keep the packed
    # (Np, G*F) / (Np, G*D) layout fused into x's producer / emb's consumer.
    xp = x2.reshape(n_groups, group * F_pad)

    # --- tile sizing (packed rows) -------------------------------------------
    # Big tiles (up to 8192 packed rows ~ 8-9 MiB of HBM traffic / step) so the
    # ~0.35 us per-step overhead vanishes; double-buffered working set capped
    # at ~40 MiB (v7x-safe); medium/large inputs split into ~4 tiles so the
    # "parallel" axis balances across both v7x TensorCores.
    bytes_per_row = 4 * group * (F_pad + 3 + D_pad)
    VMEM_BUDGET = 40 * 1024 * 1024
    tnp_cap = max(8, min(8192, (VMEM_BUDGET // (2 * bytes_per_row)) // 8 * 8))
    split_min = min(2048, tnp_cap)
    if n_groups <= split_min:
        tnp = n_groups                       # single tile; block rows == array rows
    else:
        tnp = _round_up(_cdiv(n_groups, 4), 8)
        tnp = max(split_min, min(tnp_cap, tnp))
    grid = (_cdiv(n_groups, tnp),)           # uneven last tile is masked by Pallas

    tile_bytes = tnp * bytes_per_row
    weight_bytes = 4 * (w_fc_big.size + b_big.size + w_emb_big.size)
    vmem_limit = int(min(100 * 1024 * 1024,
                         max(16 * 1024 * 1024,
                             2 * tile_bytes + weight_bytes + 8 * 1024 * 1024)))
    cost = pl.CostEstimate(
        flops=2 * N * F * 3 + 2 * N * 3 * D_out + 8 * N * 3,
        transcendentals=3 * N,
        bytes_accessed=n_rows * bytes_per_row + weight_bytes,
    )

    kernel = functools.partial(_classifier_kernel, group=group)

    logits_p, emb_p = pl.pallas_call(
        kernel,
        grid=grid,
        out_shape=(
            jax.ShapeDtypeStruct((n_groups, 3 * group), jnp.float32),
            jax.ShapeDtypeStruct((n_groups, group * D_pad), jnp.float32),
        ),
        in_specs=[
            pl.BlockSpec((tnp, group * F_pad), lambda i: (i, 0)),        # x (streamed)
            pl.BlockSpec((group * F_pad, 3 * group), lambda i: (0, 0)),  # fc weight
            pl.BlockSpec((1, 3 * group), lambda i: (0, 0)),              # fc bias
            pl.BlockSpec((3 * group, group * D_pad), lambda i: (0, 0)),  # emb weight
        ],
        out_specs=(
            pl.BlockSpec((tnp, 3 * group), lambda i: (i, 0)),
            pl.BlockSpec((tnp, group * D_pad), lambda i: (i, 0)),
        ),
        compiler_params=pltpu.CompilerParams(
            dimension_semantics=("parallel",),   # megacore sharding on v7x
            vmem_limit_bytes=vmem_limit,
        ),
        cost_estimate=cost,
    )(xp, w_fc_big, b_big, w_emb_big)

    # --- unpack (row-major) ---------------------------------------------------
    logits = logits_p.reshape(n_rows, 3)[:N].reshape(B, P, 3)
    emb = emb_p.reshape(n_rows, D_pad)[:N, :D_out].reshape(B, P, D_out)
    return logits, emb


def _reference(x, w_fc, b_fc, w_emb):
    logits = jnp.einsum("bpf,of->bpo", x, w_fc) + b_fc
    probs = jax.nn.softmax(logits, axis=-1)
    emb = jnp.einsum("bpo,do->bpd", probs, w_emb)
    return logits, emb


if __name__ == "__main__":
    # Small shapes consistent with the module's forward:
    #   B=2 batches, num_pieces=8, input_features=32, fourier d_dim=32
    B, P, F, D = 2, 8, 32, 32

    key = jax.random.PRNGKey(0)
    kx, kw1, kb1, kw2 = jax.random.split(key, 4)

    x = jax.random.normal(kx, (B, P, F), dtype=jnp.float32)
    w_fc = jax.random.normal(kw1, (3, F), dtype=jnp.float32) * 0.1
    b_fc = jax.random.normal(kb1, (3,), dtype=jnp.float32) * 0.1
    w_emb = jax.random.normal(kw2, (D, 3), dtype=jnp.float32) * 0.1

    params = prepare_params(w_fc, b_fc, w_emb)   # hoisted, done once

    logits, emb = puzzle_type_classifier(x, params)
    jax.block_until_ready((logits, emb))

    ref_logits, ref_emb = _reference(x, w_fc, b_fc, w_emb)
    assert logits.shape == (B, P, 3) and emb.shape == (B, P, D)
    assert jnp.allclose(logits, ref_logits, atol=1e-4, rtol=1e-4)
    assert jnp.allclose(emb, ref_emb, atol=1e-3, rtol=1e-3)

    print("KERNEL_OK")
</pallas_src>

<mosaic_0001>
module attributes {stable_mosaic.version = 11 : i64} {
  func.func @_classifier_kernel(%arg0: i32, %arg1: memref<4x128xf32, #tpu.memory_space<vmem>>, %arg2: memref<128x12xf32, #tpu.memory_space<vmem>>, %arg3: memref<1x12xf32, #tpu.memory_space<vmem>>, %arg4: memref<12x128xf32, #tpu.memory_space<vmem>>, %arg5: memref<4x12xf32, #tpu.memory_space<vmem>>, %arg6: memref<4x128xf32, #tpu.memory_space<vmem>>) attributes {dimension_semantics = [#tpu.dimension_semantics<parallel>], iteration_bounds = array<i64: 1>, scalar_prefetch = 0 : i64, scratch_operands = 0 : i64, tpu.core_type = #tpu.core_type<tc>, window_params = [{transform_indices = @transform_0, window_bounds = array<i64: 4, 128>}, {pipeline_mode = #tpu.pipeline_mode<synchronous>, transform_indices = @transform_1, window_bounds = array<i64: 128, 12>}, {pipeline_mode = #tpu.pipeline_mode<synchronous>, transform_indices = @transform_2, window_bounds = array<i64: 1, 12>}, {pipeline_mode = #tpu.pipeline_mode<synchronous>, transform_indices = @transform_3, window_bounds = array<i64: 12, 128>}, {transform_indices = @transform_4, window_bounds = array<i64: 4, 12>}, {transform_indices = @transform_5, window_bounds = array<i64: 4, 128>}]} {
    %c0 = arith.constant 0 : index
    %c0_0 = arith.constant 0 : index
    %0 = vector.load %arg1[%c0, %c0_0] : memref<4x128xf32, #tpu.memory_space<vmem>>, vector<4x128xf32>
    %c0_1 = arith.constant 0 : index
    %c0_2 = arith.constant 0 : index
    %1 = vector.load %arg2[%c0_1, %c0_2] : memref<128x12xf32, #tpu.memory_space<vmem>>, vector<128x12xf32>
    %cst = arith.constant dense<0.000000e+00> : vector<4x12xf32>
    %2 = tpu.matmul %0, %1, %cst {dimension_numbers = #tpu.dot_dimension_numbers<[1], [0], [0], [1], [0, 0, 1, 1], [], []>} : vector<4x128xf32>, vector<128x12xf32>, vector<4x12xf32> -> vector<4x12xf32>
    %c0_3 = arith.constant 0 : index
    %c0_4 = arith.constant 0 : index
    %3 = vector.load %arg3[%c0_3, %c0_4] : memref<1x12xf32, #tpu.memory_space<vmem>>, vector<1x12xf32>
    %4 = vector.broadcast %3 : vector<1x12xf32> to vector<4x12xf32>
    %5 = arith.addf %2, %4 : vector<4x12xf32>
    %c0_5 = arith.constant 0 : index
    %c0_6 = arith.constant 0 : index
    %6 = vector.load %arg5[%c0_5, %c0_6] : memref<4x12xf32, #tpu.memory_space<vmem>>, vector<4x12xf32>
    tpu.vector_store %arg5[%c0_5, %c0_6], %5 {strides = array<i32>} : memref<4x12xf32, #tpu.memory_space<vmem>>, vector<4x12xf32>,
    %7 = vector.extract_strided_slice %5 {offsets = [0, 0], sizes = [4, 3], strides = [1, 1]} : vector<4x12xf32> to vector<4x3xf32>
    %8 = vector.extract_strided_slice %7 {offsets = [0, 0], sizes = [4, 1], strides = [1, 1]} : vector<4x3xf32> to vector<4x1xf32>
    %9 = vector.extract_strided_slice %7 {offsets = [0, 1], sizes = [4, 1], strides = [1, 1]} : vector<4x3xf32> to vector<4x1xf32>
    %10 = arith.maximumf %8, %9 : vector<4x1xf32>
    %11 = vector.extract_strided_slice %7 {offsets = [0, 2], sizes = [4, 1], strides = [1, 1]} : vector<4x3xf32> to vector<4x1xf32>
    %12 = arith.maximumf %10, %11 : vector<4x1xf32>
    %13 = vector.broadcast %12 : vector<4x1xf32> to vector<4x3xf32>
    %14 = arith.subf %7, %13 : vector<4x3xf32>
    %15 = vector.extract_strided_slice %5 {offsets = [0, 3], sizes = [4, 3], strides = [1, 1]} : vector<4x12xf32> to vector<4x3xf32>
    %16 = vector.extract_strided_slice %15 {offsets = [0, 0], sizes = [4, 1], strides = [1, 1]} : vector<4x3xf32> to vector<4x1xf32>
    %17 = vector.extract_strided_slice %15 {offsets = [0, 1], sizes = [4, 1], strides = [1, 1]} : vector<4x3xf32> to vector<4x1xf32>
    %18 = arith.maximumf %16, %17 : vector<4x1xf32>
    %19 = vector.extract_strided_slice %15 {offsets = [0, 2], sizes = [4, 1], strides = [1, 1]} : vector<4x3xf32> to vector<4x1xf32>
    %20 = arith.maximumf %18, %19 : vector<4x1xf32>
    %21 = vector.broadcast %20 : vector<4x1xf32> to vector<4x3xf32>
    %22 = arith.subf %15, %21 : vector<4x3xf32>
    %23 = vector.extract_strided_slice %5 {offsets = [0, 6], sizes = [4, 3], strides = [1, 1]} : vector<4x12xf32> to vector<4x3xf32>
    %24 = vector.extract_strided_slice %23 {offsets = [0, 0], sizes = [4, 1], strides = [1, 1]} : vector<4x3xf32> to vector<4x1xf32>
    %25 = vector.extract_strided_slice %23 {offsets = [0, 1], sizes = [4, 1], strides = [1, 1]} : vector<4x3xf32> to vector<4x1xf32>
    %26 = arith.maximumf %24, %25 : vector<4x1xf32>
    %27 = vector.extract_strided_slice %23 {offsets = [0, 2], sizes = [4, 1], strides = [1, 1]} : vector<4x3xf32> to vector<4x1xf32>
    %28 = arith.maximumf %26, %27 : vector<4x1xf32>
    %29 = vector.broadcast %28 : vector<4x1xf32> to vector<4x3xf32>
    %30 = arith.subf %23, %29 : vector<4x3xf32>
    %31 = vector.extract_strided_slice %5 {offsets = [0, 9], sizes = [4, 3], strides = [1, 1]} : vector<4x12xf32> to vector<4x3xf32>
    %32 = vector.extract_strided_slice %31 {offsets = [0, 0], sizes = [4, 1], strides = [1, 1]} : vector<4x3xf32> to vector<4x1xf32>
    %33 = vector.extract_strided_slice %31 {offsets = [0, 1], sizes = [4, 1], strides = [1, 1]} : vector<4x3xf32> to vector<4x1xf32>
    %34 = arith.maximumf %32, %33 : vector<4x1xf32>
    %35 = vector.extract_strided_slice %31 {offsets = [0, 2], sizes = [4, 1], strides = [1, 1]} : vector<4x3xf32> to vector<4x1xf32>
    %36 = arith.maximumf %34, %35 : vector<4x1xf32>
    %37 = vector.broadcast %36 : vector<4x1xf32> to vector<4x3xf32>
    %38 = arith.subf %31, %37 : vector<4x3xf32>
    %39 = tpu.concatenate %14, %22, %30, %38 in 1 : vector<4x3xf32>, vector<4x3xf32>, vector<4x3xf32>, vector<4x3xf32> -> vector<4x12xf32>
    %40 = math.exp %39 : vector<4x12xf32>
    %41 = vector.extract_strided_slice %40 {offsets = [0, 0], sizes = [4, 3], strides = [1, 1]} : vector<4x12xf32> to vector<4x3xf32>
    %42 = vector.extract_strided_slice %41 {offsets = [0, 0], sizes = [4, 1], strides = [1, 1]} : vector<4x3xf32> to vector<4x1xf32>
    %43 = vector.extract_strided_slice %41 {offsets = [0, 1], sizes = [4, 1], strides = [1, 1]} : vector<4x3xf32> to vector<4x1xf32>
    %44 = arith.addf %42, %43 : vector<4x1xf32>
    %45 = vector.extract_strided_slice %41 {offsets = [0, 2], sizes = [4, 1], strides = [1, 1]} : vector<4x3xf32> to vector<4x1xf32>
    %46 = arith.addf %44, %45 : vector<4x1xf32>
    %47 = tpu.reciprocal %46 : vector<4x1xf32> -> vector<4x1xf32>
    %48 = vector.broadcast %47 : vector<4x1xf32> to vector<4x3xf32>
    %49 = arith.mulf %41, %48 : vector<4x3xf32>
    %50 = vector.extract_strided_slice %40 {offsets = [0, 3], sizes = [4, 3], strides = [1, 1]} : vector<4x12xf32> to vector<4x3xf32>
    %51 = vector.extract_strided_slice %50 {offsets = [0, 0], sizes = [4, 1], strides = [1, 1]} : vector<4x3xf32> to vector<4x1xf32>
    %52 = vector.extract_strided_slice %50 {offsets = [0, 1], sizes = [4, 1], strides = [1, 1]} : vector<4x3xf32> to vector<4x1xf32>
    %53 = arith.addf %51, %52 : vector<4x1xf32>
    %54 = vector.extract_strided_slice %50 {offsets = [0, 2], sizes = [4, 1], strides = [1, 1]} : vector<4x3xf32> to vector<4x1xf32>
    %55 = arith.addf %53, %54 : vector<4x1xf32>
    %56 = tpu.reciprocal %55 : vector<4x1xf32> -> vector<4x1xf32>
    %57 = vector.broadcast %56 : vector<4x1xf32> to vector<4x3xf32>
    %58 = arith.mulf %50, %57 : vector<4x3xf32>
    %59 = vector.extract_strided_slice %40 {offsets = [0, 6], sizes = [4, 3], strides = [1, 1]} : vector<4x12xf32> to vector<4x3xf32>
    %60 = vector.extract_strided_slice %59 {offsets = [0, 0], sizes = [4, 1], strides = [1, 1]} : vector<4x3xf32> to vector<4x1xf32>
    %61 = vector.extract_strided_slice %59 {offsets = [0, 1], sizes = [4, 1], strides = [1, 1]} : vector<4x3xf32> to vector<4x1xf32>
    %62 = arith.addf %60, %61 : vector<4x1xf32>
    %63 = vector.extract_strided_slice %59 {offsets = [0, 2], sizes = [4, 1], strides = [1, 1]} : vector<4x3xf32> to vector<4x1xf32>
    %64 = arith.addf %62, %63 : vector<4x1xf32>
    %65 = tpu.reciprocal %64 : vector<4x1xf32> -> vector<4x1xf32>
    %66 = vector.broadcast %65 : vector<4x1xf32> to vector<4x3xf32>
    %67 = arith.mulf %59, %66 : vector<4x3xf32>
    %68 = vector.extract_strided_slice %40 {offsets = [0, 9], sizes = [4, 3], strides = [1, 1]} : vector<4x12xf32> to vector<4x3xf32>
    %69 = vector.extract_strided_slice %68 {offsets = [0, 0], sizes = [4, 1], strides = [1, 1]} : vector<4x3xf32> to vector<4x1xf32>
    %70 = vector.extract_strided_slice %68 {offsets = [0, 1], sizes = [4, 1], strides = [1, 1]} : vector<4x3xf32> to vector<4x1xf32>
    %71 = arith.addf %69, %70 : vector<4x1xf32>
    %72 = vector.extract_strided_slice %68 {offsets = [0, 2], sizes = [4, 1], strides = [1, 1]} : vector<4x3xf32> to vector<4x1xf32>
    %73 = arith.addf %71, %72 : vector<4x1xf32>
    %74 = tpu.reciprocal %73 : vector<4x1xf32> -> vector<4x1xf32>
    %75 = vector.broadcast %74 : vector<4x1xf32> to vector<4x3xf32>
    %76 = arith.mulf %68, %75 : vector<4x3xf32>
    %77 = tpu.concatenate %49, %58, %67, %76 in 1 : vector<4x3xf32>, vector<4x3xf32>, vector<4x3xf32>, vector<4x3xf32> -> vector<4x12xf32>
    %c0_7 = arith.constant 0 : index
    %c0_8 = arith.constant 0 : index
    %78 = vector.load %arg4[%c0_7, %c0_8] : memref<12x128xf32, #tpu.memory_space<vmem>>, vector<12x128xf32>
    %cst_9 = arith.constant dense<0.000000e+00> : vector<4x128xf32>
    %79 = tpu.matmul %77, %78, %cst_9 {dimension_numbers = #tpu.dot_dimension_numbers<[1], [0], [0], [1], [0, 0, 1, 1], [], []>} : vector<4x12xf32>, vector<12x128xf32>, vector<4x128xf32> -> vector<4x128xf32>
    %c0_10 = arith.constant 0 : index
    %c0_11 = arith.constant 0 : index
    %80 = vector.load %arg6[%c0_10, %c0_11] : memref<4x128xf32, #tpu.memory_space<vmem>>, vector<4x128xf32>
    tpu.vector_store %arg6[%c0_10, %c0_11], %79 {strides = array<i32>} : memref<4x128xf32, #tpu.memory_space<vmem>>, vector<4x128xf32>,
    return
  }
  func.func @transform_0(%arg0: i32) -> (i32, i32) {
    %c0_i32 = arith.constant 0 : i32
    %c0_i32_0 = arith.constant 0 : i32
    return %arg0, %c0_i32 : i32, i32
  }
  func.func @transform_1(%arg0: i32) -> (i32, i32) {
    %c0_i32 = arith.constant 0 : i32
    %c0_i32_0 = arith.constant 0 : i32
    %c0_i32_1 = arith.constant 0 : i32
    return %c0_i32, %c0_i32_0 : i32, i32
  }
  func.func @transform_2(%arg0: i32) -> (i32, i32) {
    %c0_i32 = arith.constant 0 : i32
    %c0_i32_0 = arith.constant 0 : i32
    %c0_i32_1 = arith.constant 0 : i32
    return %c0_i32, %c0_i32_0 : i32, i32
  }
  func.func @transform_3(%arg0: i32) -> (i32, i32) {
    %c0_i32 = arith.constant 0 : i32
    %c0_i32_0 = arith.constant 0 : i32
    %c0_i32_1 = arith.constant 0 : i32
    return %c0_i32, %c0_i32_0 : i32, i32
  }
  func.func @transform_4(%arg0: i32) -> (i32, i32) {
    %c0_i32 = arith.constant 0 : i32
    %c0_i32_0 = arith.constant 0 : i32
    return %arg0, %c0_i32 : i32, i32
  }
  func.func @transform_5(%arg0: i32) -> (i32, i32) {
    %c0_i32 = arith.constant 0 : i32
    %c0_i32_0 = arith.constant 0 : i32
    return %arg0, %c0_i32 : i32, i32
  }
}

</mosaic_0001>

<bundles_post_ra>
// kernel: tpu_custom_call.1
= control target key start
LH: loop header
LB: loop body
LE: loop exit
PB: predicated region body
PF: predicated region fallthrough
CT: control target
= control target key end

     0   :  { %11 = vsyncpa [#allocation3], 0  ;;  %v464_v3 = vmov 0.0|0.0   ;;  %vm465_vm0 = vmmov 0   ;;  %v466_v6 = vmov 0.0   ;;  %s600_s0 = inlined_call_operand.vmem [shape: f32[4,128], index: 0, kind: input, shape index: {}]   ;;  %s601_s1 = inlined_call_operand.vmem [shape: f32[128,12], index: 1, kind: input, shape index: {}]   ;;  %s602_s2 = inlined_call_operand.vmem [shape: f32[1,12], index: 2, kind: input, shape index: {}]   ;;  %s603_s3 = inlined_call_operand.vmem [shape: f32[12,128], index: 3, kind: input, shape index: {}]   ;;  %s604_s4 = inlined_call_operand.hbm [shape: f32[4,12], index: 4, kind: output, shape index: {0}]   ;;  %s605_s5 = inlined_call_operand.hbm [shape: f32[4,128], index: 5, kind: output, shape index: {1}]  }
   0x1   :  { %v22_v0 = vld [vmem:[%s601_s1] sm:$0xff]  ;;  %v23_v1 = vld [vmem:[%s601_s1 + $0x8] sm:$0xff]  ;;  %v24_v2 = vld [vmem:[%s601_s1 + $0x10] sm:$0xff]  ;;  %363 = vmatprep.subr.bf16.mxu0 %v464_v3  ;;  %353 = vmatprep.mubr.msk.f32.mxu0 %vm465_vm0, %v466_v6 }
   0x2   :  { %v364_v4 = vpack.c.bf16 %v23_v1, %v22_v0  ;;  %v25_v5 = vld [vmem:[%s601_s1 + $0x18] sm:$0xff]  ;;  %387 = vmatprep.subr.bf16.mxu1 %v464_v3  ;;  %360 = vmatprep.mubr.msk.f32.mxu1 %vm465_vm0, %v466_v6  ;;  %v26_v8 = vld [vmem:[%s601_s1 + $0x20] sm:$0xff]  ;;  %v27_v9 = vld [vmem:[%s601_s1 + $0x28] sm:$0xff] }
   0x3   :  { %v367_v7 = vpack.c.bf16 %v25_v5, %v24_v2 }
   0x4   :  { %365 = vmatpush3.bf16.msra.mxu0 %v364_v4 }
   0x5   :  { %366 = vmatprep.subr.bf16.mxu0 %v464_v3 }
   0x6   :  { %12 = vsyncpa [#allocation5], 0  ;;  %v370_v10 = vpack.c.bf16 %v27_v9, %v26_v8  ;;  %v28_v11 = vld [vmem:[%s601_s1 + $0x30] sm:$0xff]  ;;  %v29_v12 = vld [vmem:[%s601_s1 + $0x38] sm:$0xff]  ;;  %v467_v27 = vmov 6   ;;  %v468_v28 = vmov 0  }
   0x7   :  { %v373_v13 = vpack.c.bf16 %v29_v12, %v28_v11  ;;  %v30_v14 = vld [vmem:[%s601_s1 + $0x40] sm:$0xff]  ;;  %v31_v15 = vld [vmem:[%s601_s1 + $0x48] sm:$0xff]  ;;  %v32_v17 = vld [vmem:[%s601_s1 + $0x50] sm:$0xff]  ;;  %405 = vset.pattern.permute.xlu0 %v467_v27  ;;  %403 = vset.pattern.permute.xlu1 %v468_v28  ;;  %vm115_vm1 = vcmask 93184   ;;  %s470_s29 = smov 126   ;;  %v471_v37 = vmov 3  }
   0x8   :  { %368 = vmatpush3.bf16.msra.mxu0 %v367_v7  ;;  %v376_v16 = vpack.c.bf16 %v31_v15, %v30_v14  ;;  %v33_v18 = vld [vmem:[%s601_s1 + $0x58] sm:$0xff]  ;;  %v34_v20 = vld [vmem:[%s601_s1 + $0x60] sm:$0xff]  ;;  %v35_v21 = vld [vmem:[%s601_s1 + $0x68] sm:$0xff]  ;;  %v472_v38 = vmov 9   ;;  %vm147_vm2 = vcmask 23552   ;;  %vm149_vm3 = vcmask 48128  }
   0x9   :  { %369 = vmatprep.subr.bf16.mxu0 %v464_v3  ;;  %v379_v19 = vpack.c.bf16 %v33_v18, %v32_v17  ;;  %v382_v22 = vpack.c.bf16 %v35_v21, %v34_v20  ;;  %v36_v23 = vld [vmem:[%s601_s1 + $0x70] sm:$0xff]  ;;  %v37_v24 = vld [vmem:[%s601_s1 + $0x78] sm:$0xff]  ;;  %v21_v26 = vld [vmem:[%s600_s0] sm:$0xf]  ;;  %s469_s1 = smov 127   ;;  %vm151_vm4 = vcmask 72704  }
   0xa   :  { %v385_v25 = vpack.c.bf16 %v37_v24, %v36_v23  ;;  %v298_v29 = vld [vmem:[%s602_s2] ss:$0 sm:$0xff]  ;;  %v190_v58 = vld [vmem:[%s603_s3 + $0x8] sm:$0xf]  ;;  %vm195_vm5 = vcmask 1043456   ;;  %vm473_vm6 = vmmov 1  }
   0xb   :  { %v189_v57 = vld [vmem:[%s603_s3] sm:$0xff]  ;;  %vm389_vm7 = vmpackc.low %vm195_vm5, %vm473_vm6  ;;  %vm191_vm8 = vcmask 97280   ;;  %s474_s3 = smov [#allocation2]  }
   0xc   :  { %371 = vmatpush3.bf16.msra.mxu0 %v370_v10  ;;  %v388_v59 = vpack.c.bf16 %v190_v58, %v189_v57  ;;  %s276_s7 = sshll.u32 %s474_s3, 4  ;;  %s277_s7 = int_to_ptr.vmem [resolvable:$true] %s276_s7 }
   0xd   :  { %372 = vmatprep.subr.bf16.mxu0 %v464_v3  ;;  %s416_s8 = scalar_lea.vmem %s277_s7, 64  ;;  %p421_p1 = scmp.lt.s32.totalorder %s277_s7, %s277_s7 }
   0xe   :  { %390 = vmatpush3.bf16.msk.msra.mxu1 %vm389_vm7, %v388_v59  ;;  %p417_p0 = scmp.ne.s32.totalorder %s277_s7, %s416_s8  ;;  %p422_p2 = scmp.lt.s32.totalorder %s416_s8, %s416_s8 }
  0x10   :  { %374 = vmatpush3.bf16.msra.mxu0 %v373_v13  ;;  %p423_p3 = por %p422_p2, %p421_p1 }
  0x11   :  { %375 = vmatprep.subr.bf16.mxu0 %v464_v3 }
  0x12   :  { %p424_p4 = pnand %p423_p3, %p417_p0 }
  0x14   :  { %377 = vmatpush3.bf16.msra.mxu0 %v376_v16 }
  0x15   :  { %378 = vmatprep.subr.bf16.mxu0 %v464_v3 }
  0x18   :  { %380 = vmatpush3.bf16.msra.mxu0 %v379_v19 }
  0x19   :  { %381 = vmatprep.subr.bf16.mxu0 %v464_v3 }
  0x1c   :  { %383 = vmatpush3.bf16.msra.mxu0 %v382_v22 }
  0x1d   :  { %384 = vmatprep.subr.bf16.mxu0 %v464_v3 }
  0x20   :  { %386 = vmatpush3.bf16.msra.mxu0 %v385_v25 }
  0x23   :  { %354 = vmatmul.mubr.f32.vlgmr.msra.gmra.mrb[0].mxu0 %v21_v26 }
  0xf6   :  { %v111_v30 = vpop.f32.mrb[0].mxu0 }
  0xf7   :  { %v112_v31 = vadd.f32 %v298_v29, %v111_v30  ;;  %v355_v32 = vpop.f32.mrb[1].mxu0 }
  0xf9   :  { %118 = vrot.lane.b32.xlu0 %v112_v31, %s469_s1  ;;  %116 = vst.msk [vmem:[#allocation2] sm:$0xf] %vm115_vm1, %v112_v31 }
  0xfd   :  { %122 = vrot.lane.b32.xlu0 %v112_v31, %s470_s29 }
 0x16b   :  { %v119_v33 = vpop.permute.xlu0 %118 }
 0x16c   :  { %v121_v34 = vmax.f32 %v112_v31, %v119_v33 }
 0x16f   :  { %v123_v35 = vpop.permute.xlu0 %122 }
 0x170   :  { %v125_v36 = vmax.f32 %v121_v34, %v123_v35 }
 0x172   :  { %138 = vperm.xlu0 %405, %v125_v36   ;;  %128 = vperm.xlu1 %403, %v125_v36  }
 0x176   :  { %404 = vset.pattern.permute.xlu1 %v471_v37  ;;  %408 = vset.pattern.permute.xlu0 %v471_v37 }
 0x177   :  { %133 = vperm.xlu1 %404, %v125_v36  }
 0x17b   :  { %406 = vset.pattern.permute.xlu1 %v472_v38 }
 0x17c   :  { %143 = vperm.xlu1 %406, %v125_v36  }
 0x180   :  { %407 = vset.pattern.permute.xlu1 %v468_v28 }
 0x1f1   :  { %v129_v39 = vpop.permute.xlu1 %128  ;;  %v139_v42 = vpop.permute.xlu0 %138 }
 0x1f2   :  { %v131_v43 = vsub.f32 %v112_v31, %v129_v39  ;;  %v141_v45 = vsub.f32 %v112_v31, %v139_v42 }
 0x1f6   :  { %v134_v40 = vpop.permute.xlu1 %133 }
 0x1f7   :  { %v136_v41 = vsub.f32 %v112_v31, %v134_v40 }
 0x1f9   :  { %v148_v44 = vsel %vm147_vm2, %v131_v43, %v136_v41 }
 0x1fa   :  { %v150_v48 = vsel %vm149_vm3, %v148_v44, %v141_v45 }
 0x1fb   :  { %v144_v46 = vpop.permute.xlu1 %143 }
 0x1fc   :  { %v146_v47 = vsub.f32 %v112_v31, %v144_v46 }
 0x1fe   :  { %v152_v49 = vsel %vm151_vm4, %v150_v48, %v146_v47 }
 0x1ff   :  { %v153_v50 = vmul.f32 1.442695, %v152_v49 }
 0x201   :  { %412 = vpow2.f32 %v153_v50 }
 0x20b   :  { %v413_v51 = vpop.eup %412 }
 0x20c   :  { %160 = vrot.lane.b32.xlu0 %v413_v51, %s470_s29  ;;  %156 = vrot.lane.b32.xlu1 %v413_v51, %s469_s1 }
 0x27e   :  { %v157_v52 = vpop.permute.xlu1 %156  ;;  %v161_v54 = vpop.permute.xlu0 %160 }
 0x27f   :  { %v159_v53 = vadd.f32 %v413_v51, %v157_v52 }
 0x281   :  { %v163_v55 = vadd.f32 %v161_v54, %v159_v53 }
 0x283   :  { %414 = vrcp.f32 %v163_v55 }
 0x28d   :  { %v415_v56 = vpop.eup %414 }
 0x28e   :  { %172 = vperm.xlu0 %408, %v415_v56   ;;  %167 = vperm.xlu1 %407, %v415_v56  }
 0x292   :  { %409 = vset.pattern.permute.xlu1 %v467_v27  ;;  %411 = vset.pattern.permute.xlu0 %v472_v38 }
 0x293   :  { %177 = vperm.xlu1 %409, %v415_v56  }
 0x297   :  { %410 = vset.pattern.permute.xlu1 %v472_v38 }
 0x298   :  { %182 = vperm.xlu1 %410, %v415_v56  }
 0x30d   :  { %v168_v60 = vpop.permute.xlu1 %167  ;;  %v173_v61 = vpop.permute.xlu0 %172 }
 0x30e   :  { %v175_v63 = vmul.f32 %v413_v51, %v173_v61  ;;  %v170_v0 = vmul.f32 %v413_v51, %v168_v60 }
 0x310   :  { %v186_v3 = vsel %vm147_vm2, %v170_v0, %v175_v63 }
 0x312   :  { %v178_v62 = vpop.permute.xlu1 %177 }
 0x313   :  { %v180_v1 = vmul.f32 %v413_v51, %v178_v62 }
 0x315   :  { %v187_v5 = vsel %vm149_vm3, %v186_v3, %v180_v1 }
 0x317   :  { %v183_v2 = vpop.permute.xlu1 %182 }
 0x318   :  { %v185_v4 = vmul.f32 %v413_v51, %v183_v2 }
 0x31a   :  { %v188_v6 = vsel %vm151_vm4, %v187_v5, %v185_v4 }
 0x31b   :  { %361 = vmatmul.mubr.msk.f32.vlgmr.msra.gmra.mrb[0].mxu1 %vm191_vm8, %v188_v6 }
 0x31c   :  { %427 = shalt.err (!%p424_p4)
}
 0x31d   :  { %s428_s11 = scalar_lea.hbm %s604_s4, 64 }
 0x31e   :  { %p429_p5 = scmp.ne.s32.totalorder %s604_s4, %s428_s11  ;;  %p432_p6 = scmp.lt.u32.totalorder %s428_s11, %s604_s4 }
 0x320   :  { %p434_p7 = pnand %p432_p6, %p429_p5 }
 0x322   :  { %437 = shalt.err (!%p434_p7)
}
 0x323   :  { %279 = dma.vmem_to_hbm [thread:$0]  %s277_s7, 64, %s604_s4, [#allocation3]  }
 0x324   :  { %s475_s18 = smov [#allocation4]  }
 0x325   :  { %s286_s19 = sshll.u32 %s475_s18, 4  ;;  %s287_s19 = int_to_ptr.vmem [resolvable:$true] %s286_s19 }
 0x326   :  { %s438_s20 = scalar_lea.vmem %s287_s19, 64  ;;  %p443_p9 = scmp.lt.s32.totalorder %s287_s19, %s287_s19 }
 0x327   :  { %p439_p8 = scmp.ne.s32.totalorder %s287_s19, %s438_s20  ;;  %p444_p10 = scmp.lt.s32.totalorder %s438_s20, %s438_s20 }
 0x329   :  { %p445_p11 = por %p444_p10, %p443_p9 }
 0x32b   :  { %p446_p12 = pnand %p445_p11, %p439_p8 }
 0x3ee   :  { %v265_v7 = vpop.f32.mrb[0].mxu1 }
 0x3ef   :  { %269 = vst [vmem:[#allocation4] sm:$0xf] %v265_v7  ;;  %v362_v8 = vpop.f32.mrb[1].mxu1 }
 0x3f0   :  { %449 = shalt.err (!%p446_p12)
}
 0x3f1   :  { %s450_s23 = scalar_lea.hbm %s605_s5, 64 }
 0x3f2   :  { %p451_p13 = scmp.ne.s32.totalorder %s605_s5, %s450_s23  ;;  %p454_p0 = scmp.lt.u32.totalorder %s450_s23, %s605_s5 }
 0x3f4   :  { %p456_p1 = pnand %p454_p0, %p451_p13 }
 0x3f6   :  { %459 = shalt.err (!%p456_p1)
}
 0x3f7   :  { %289 = dma.vmem_to_hbm [thread:$0]  %s287_s19, 64, %s605_s5, [#allocation5]  }
 0x3f8   :  { %460 = dma.done.wait [#allocation3], 64  }
 0x3f9   :  { %461 = vsyncadd [#allocation3], 4294967232 }
 0x3fa   :  { %462 = dma.done.wait [#allocation5], 64  }
 0x3fb   :  { %463 = vsyncadd [#allocation5], 4294967232 }
 0x3fc   :  { %296 = vsyncpa [#allocation3], 1 }
 0x3fd   :  { %297 = vsyncpa [#allocation5], 1 }

</bundles_post_ra>
